<compile_context>
chip_gen: v5e
topology: v5e:2x2
jax: 0.10.0
libtpu: 0.0.40
codegen_flags: <defaults>
</compile_context>

<pallas_src>
import functools

import jax
import jax.numpy as jnp
from jax.experimental import pallas as pl
from jax.experimental.pallas import tpu as pltpu


def _round_up(a, b):
    return (a + b - 1) // b * b


def _cdiv(a, b):
    return (a + b - 1) // b


def _gap_kernel_single(x_ref, o_ref, *, inv_hw):
    """Single hw step: x_ref (TR, HW) -> o_ref (1, 1, TR) row means."""
    tr = x_ref.shape[0]
    row_sum = jnp.sum(x_ref[...].astype(jnp.float32), axis=-1)          # (TR,)
    o_ref[...] = (row_sum * inv_hw).reshape(1, 1, tr).astype(o_ref.dtype)


def _gap_kernel_multi(x_ref, o_ref, acc_ref, *, hw, inv_hw, last_base):
    """Tiled hw: accumulate (TR, HWT) blocks into a (TR, 128) f32 scratch."""
    k = pl.program_id(1)

    @pl.when(k == 0)
    def _():
        acc_ref[...] = jnp.zeros_like(acc_ref)

    hw_tile = x_ref.shape[-1]
    num_chunks = hw_tile // 128
    col0 = k * hw_tile
    acc = acc_ref[...]
    for j in range(num_chunks):
        chunk = x_ref[:, j * 128:(j + 1) * 128].astype(jnp.float32)
        # Only the trailing chunk(s) of the LAST hw step can run past hw; the
        # dynamic mask below is all-True on earlier steps, so the static guard
        # keeps every always-in-bounds chunk completely mask-free.
        if last_base + (j + 1) * 128 > hw:
            cols = col0 + j * 128 + jax.lax.broadcasted_iota(
                jnp.int32, (1, 128), 1)
            chunk = jnp.where(cols < hw, chunk, 0.0)
        acc = acc + chunk
    acc_ref[...] = acc

    @pl.when(k == pl.num_programs(1) - 1)
    def _():
        tr = acc_ref.shape[0]
        # Single O(TR) cross-lane reduce, scaled by the TRUE 1/(H*W), emitted
        # as a lane-dense (1, 1, TR) row.
        row_sum = jnp.sum(acc_ref[...], axis=-1)                        # (TR,)
        o_ref[...] = (row_sum * inv_hw).reshape(1, 1, tr).astype(o_ref.dtype)


def global_avg_pool2d(x, *, target_block_bytes=8 * 1024 * 1024, max_hw_tile=4096):
    """x: (N, C, H, W) -> (N, C, 1, 1), mean over H and W."""
    N, C, H, W = x.shape
    rows = N * C
    hw = H * W
    x2 = x.reshape(rows, hw)                  # contiguous reshape: no HBM copy

    itemsize = jnp.dtype(x.dtype).itemsize
    sublane = max(8, 32 // itemsize)          # 8 f32, 16 bf16, 32 int8

    # ---- spatial (reduction) tiling: no wrapper padding ----
    hw_128 = _round_up(hw, 128)
    single_step = hw_128 <= max_hw_tile
    if single_step:
        hw_tile = hw                          # full last dim: 128-rule exempt
        n_hw_steps = 1
        max_row_tile = 4096
    else:
        # Smallest number of 128-aligned hw tiles that fits under max_hw_tile;
        # the <=127-element overhang of the final tile is masked in-kernel.
        n_min = _cdiv(hw_128, max_hw_tile)
        hw_tile = _round_up(_cdiv(hw_128, n_min), 128)
        n_hw_steps = _cdiv(hw, hw_tile)
        max_row_tile = 2048                   # keeps (TR,128) f32 acc <= 1 MiB

    # ---- row tiling ----
    row_tile = (target_block_bytes // (hw_tile * itemsize)) // sublane * sublane
    row_tile = max(sublane, min(row_tile, max_row_tile))
    row_tile = min(row_tile, _round_up(rows, sublane))
    # Keep >= 2 row tiles whenever possible so the "parallel" row axis can be
    # sharded across both TensorCores on megacore parts (no-op on 1-TC chips).
    if rows >= 2 * sublane:
        row_tile = min(row_tile, _round_up(_cdiv(rows, 2), sublane))
    n_row_tiles = _cdiv(rows, row_tile)

    inv_hw = 1.0 / float(hw)
    out_shape = jax.ShapeDtypeStruct((n_row_tiles, 1, row_tile), x.dtype)

    # ---- VMEM budget: double-buffered input + f32 temps + accumulator ----
    block_bytes = row_tile * hw_tile * itemsize
    vmem_need = 2 * block_bytes                       # double-buffered input
    if single_step and itemsize != 4:
        vmem_need += row_tile * hw_tile * 4           # f32 cast of the block
    vmem_need += row_tile * 128 * 4 * 2               # acc scratch + chunk temp
    vmem_need += 2 * row_tile * 4                     # output blocks (tiny)
    vmem_limit = max(32 << 20, min(48 << 20, int(vmem_need * 1.25) + (4 << 20)))

    cost = pl.CostEstimate(
        flops=int(rows) * int(hw),
        transcendentals=0,
        bytes_accessed=int(rows) * int(hw) * itemsize + int(rows) * itemsize,
    )

    if single_step:
        kernel = functools.partial(_gap_kernel_single, inv_hw=inv_hw)
        out = pl.pallas_call(
            kernel,
            out_shape=out_shape,
            grid_spec=pltpu.PrefetchScalarGridSpec(
                num_scalar_prefetch=0,
                grid=(n_row_tiles,),
                in_specs=[pl.BlockSpec((row_tile, hw_tile), lambda i: (i, 0))],
                out_specs=pl.BlockSpec((1, 1, row_tile), lambda i: (i, 0, 0)),
            ),
            compiler_params=pltpu.CompilerParams(
                dimension_semantics=("parallel",),
                vmem_limit_bytes=vmem_limit,
            ),
            cost_estimate=cost,
        )(x2)
    else:
        last_base = (n_hw_steps - 1) * hw_tile
        kernel = functools.partial(
            _gap_kernel_multi, hw=hw, inv_hw=inv_hw, last_base=last_base)
        out = pl.pallas_call(
            kernel,
            out_shape=out_shape,
            grid_spec=pltpu.PrefetchScalarGridSpec(
                num_scalar_prefetch=0,
                grid=(n_row_tiles, n_hw_steps),
                in_specs=[pl.BlockSpec((row_tile, hw_tile), lambda i, k: (i, k))],
                out_specs=pl.BlockSpec((1, 1, row_tile), lambda i, k: (i, 0, 0)),
                scratch_shapes=[pltpu.VMEM((row_tile, 128), jnp.float32)],
            ),
            compiler_params=pltpu.CompilerParams(
                dimension_semantics=("parallel", "arbitrary"),
                vmem_limit_bytes=vmem_limit,
            ),
            cost_estimate=cost,
        )(x2)

    # Overhanging (garbage) row-tile tails are sliced off here.
    return out.reshape(n_row_tiles * row_tile)[:rows].reshape(N, C, 1, 1)


def _check(x, atol=1e-5, rtol=1e-5):
    y = global_avg_pool2d(x)
    jax.block_until_ready(y)
    ref = jnp.mean(x.astype(jnp.float32), axis=(2, 3), keepdims=True).astype(x.dtype)
    assert y.shape == (x.shape[0], x.shape[1], 1, 1)
    assert jnp.allclose(y.astype(jnp.float32), ref.astype(jnp.float32),
                        atol=atol, rtol=rtol), (y, ref)


if __name__ == "__main__":
    key = jax.random.PRNGKey(0)
    k0, k1, k2, k3 = jax.random.split(key, 4)

    # Small, module-consistent shape (batch=2, channels=4, spatial=16x16):
    # single-hw-step path, no padding anywhere.
    _check(jax.random.normal(k0, (2, 4, 16, 16), dtype=jnp.float32))

    # Larger spatial size: exercises the tiled-hw path + in-kernel tail mask.
    _check(jax.random.normal(k1, (2, 16, 72, 72), dtype=jnp.float32))

    # Ragged rows / spatial size: exercises row-block overhang (no pad copy).
    _check(jax.random.normal(k2, (3, 5, 9, 11), dtype=jnp.float32))

    # bf16 input: exercises 16-sublane row tiles + f32 accumulation.
    _check(jax.random.normal(k3, (2, 4, 16, 16), dtype=jnp.bfloat16),
           atol=1e-2, rtol=1e-2)

    print("KERNEL_OK")
</pallas_src>

<mosaic_0001>
module attributes {stable_mosaic.version = 11 : i64} {
  func.func @_gap_kernel_single(%arg0: i32, %arg1: memref<8x256xf32, #tpu.memory_space<vmem>>, %arg2: memref<1x1x8xf32, #tpu.memory_space<vmem>>) attributes {dimension_semantics = [#tpu.dimension_semantics<parallel>], iteration_bounds = array<i64: 1>, scalar_prefetch = 0 : i64, scratch_operands = 0 : i64, tpu.core_type = #tpu.core_type<tc>, window_params = [{transform_indices = @transform_0, window_bounds = array<i64: 8, 256>}, {transform_indices = @transform_1, window_bounds = array<i64: 1, 1, 8>}]} {
    %c0 = arith.constant 0 : index
    %c0_0 = arith.constant 0 : index
    %0 = vector.load %arg1[%c0, %c0_0] : memref<8x256xf32, #tpu.memory_space<vmem>>, vector<8x256xf32>
    %cst = arith.constant dense<0.000000e+00> : vector<8xf32>
    %1 = vector.multi_reduction <add>, %0, %cst [1] : vector<8x256xf32> to vector<8xf32>
    %cst_1 = arith.constant 3.906250e-03 : f32
    %2 = vector.broadcast %cst_1 : f32 to vector<8xf32>
    %3 = arith.mulf %1, %2 : vector<8xf32>
    %4 = vector.shape_cast %3 : vector<8xf32> to vector<1x1x8xf32>
    %c0_2 = arith.constant 0 : index
    %c0_3 = arith.constant 0 : index
    %c0_4 = arith.constant 0 : index
    %5 = vector.load %arg2[%c0_2, %c0_3, %c0_4] : memref<1x1x8xf32, #tpu.memory_space<vmem>>, vector<1x1x8xf32>
    tpu.vector_store %arg2[%c0_2, %c0_3, %c0_4], %4 {strides = array<i32>} : memref<1x1x8xf32, #tpu.memory_space<vmem>>, vector<1x1x8xf32>,
    return
  }
  func.func @transform_0(%arg0: i32) -> (i32, i32) {
    %c0_i32 = arith.constant 0 : i32
    %c0_i32_0 = arith.constant 0 : i32
    return %arg0, %c0_i32 : i32, i32
  }
  func.func @transform_1(%arg0: i32) -> (i32, i32, i32) {
    %c0_i32 = arith.constant 0 : i32
    %c0_i32_0 = arith.constant 0 : i32
    %c0_i32_1 = arith.constant 0 : i32
    return %arg0, %c0_i32, %c0_i32_0 : i32, i32, i32
  }
}

</mosaic_0001>

<bundles_post_ra>
// kernel: tpu_custom_call.1
= control target key start
LH: loop header
LB: loop body
LE: loop exit
PB: predicated region body
PF: predicated region fallthrough
CT: control target
= control target key end

     0   :  { %6 = vsyncpa [#allocation3], 0  ;;  %s125_s0 = inlined_call_operand.hbm [shape: f32[8,256], index: 0, kind: input, shape index: {}]   ;;  %s126_s1 = inlined_call_operand.hbm [shape: f32[1,1,8], index: 1, kind: output, shape index: {}]  }
   0x1   :  { %7 = vsyncpa [#allocation4], 0  ;;  %s13_s8 = sshll.u32 %s125_s0, 4  ;;  %s107_s9 = smov [#allocation2]   ;;  %s14_s8 = int_to_ptr.hbm [resolvable:$true] %s13_s8 }
   0x2   :  { %s15_s10 = sshll.u32 %s107_s9, 4  ;;  %s16_s10 = int_to_ptr.vmem [resolvable:$true] %s15_s10 }
   0x3   :  { %18 = dma.hbm_to_vmem [thread:$0]  %s14_s8, 256, %s16_s10, [#allocation3]  }
   0x4   :  { %103 = dma.done.wait [#allocation3], 256  }
   0x5   :  { %104 = vsyncadd [#allocation3], 4294967040  ;;  %v23_v0 = vld [vmem:[#allocation2] sm:$0xff]  ;;  %v24_v1 = vld [vmem:[#allocation2 + $0x8] sm:$0xff]  ;;  %v30_v3 = vlaneseq  ;;  %s108_s11 = smov [#allocation5]   ;;  %s43_s0 = sshll.u32 %s126_s1, 4  ;;  %s44_s0 = int_to_ptr.hbm [resolvable:$true] %s43_s0 }
   0x6   :  { %v25_v2 = vadd.f32 %v24_v1, %v23_v0  ;;  %s41_s12 = sshll.u32 %s108_s11, 4  ;;  %vm34_vm0 = vcmask 57344   ;;  %s42_s12 = int_to_ptr.vmem [resolvable:$true] %s41_s12 }
   0x7   :  { %v31_v4 = vand.u32 127, %v30_v3 }
   0x8   :  { %26 = vadd.xlane.f32.xlu0 %v25_v2 }
  0x7b   :  { %v27_v5 = vpop.xlane.xlu0 %26 }
  0x7c   :  { %v28_v6 = vmul.f32 0.00390625, %v27_v5 }
  0x7e   :  { %v32_v7 = vperm.slane %v28_v6, %v31_v4 }
  0x80   :  { %35 = vst.msk [vmem:[#allocation5] sm:$0x1] %vm34_vm0, %v32_v7 }
  0x81   :  { %46 = dma.vmem_to_hbm [thread:$0]  %s42_s12, 16, %s44_s0, [#allocation4]  }
  0x82   :  { %105 = dma.done.wait [#allocation4], 16  }
  0x83   :  { %106 = vsyncadd [#allocation4], 4294967280 }
  0x84   :  { %51 = vsyncpa [#allocation3], 1 }
  0x85   :  { %52 = vsyncpa [#allocation4], 1 }

</bundles_post_ra>
